<compile_context>
chip_gen: v6e
topology: v6e:2x2x1
jax: 0.10.0
libtpu: 0.0.40
codegen_flags: <defaults>
</compile_context>

<pallas_src>
import jax
import jax.numpy as jnp
from jax.experimental import pallas as pl
from jax.experimental.pallas import tpu as pltpu

_LANE = 128
_SUBLANE = 8


def _swish_kernel(x_ref, o_ref):
    xf = x_ref[...].astype(jnp.float32)
    # Exact sigmoid: the kernel is HBM-bound on every generation, so the EUP
    # work is free, and it is numerically stable in both tails.
    o_ref[...] = (xf * jax.nn.sigmoid(xf)).astype(o_ref.dtype)


def _round_up(x: int, m: int) -> int:
    return ((x + m - 1) // m) * m


def swish_pallas(x: jax.Array, *, min_pallas_bytes: int = 256 * 1024) -> jax.Array:
    """Elementwise Swish: x * sigmoid(x). Matches torch's x.mul(x.sigmoid())."""
    orig_shape = x.shape
    orig_dtype = x.dtype
    n = x.size
    itemsize = jnp.dtype(orig_dtype).itemsize

    if n == 0:
        return x

    # Tiny tensors: a fused XLA elementwise beats pallas_call launch overhead
    # and avoids any reshape/pad plumbing entirely.
    if n * itemsize < min_pallas_bytes:
        return x * jax.nn.sigmoid(x)

    # Pad only to a multiple of the lane width (128). Pallas masks the partial
    # last block along the sublane axis, so no sublane-quantum padding needed.
    n_pad = _round_up(n, _LANE)
    flat = x.reshape(-1)
    if n_pad != n:
        flat = jnp.pad(flat, (0, n_pad - n))  # swish(0) == 0; tail is discarded

    # Widest lane-dense slab that divides n_pad (wider innermost dim => fewer,
    # larger DMA rows and guaranteed unmasked full-width stores).
    width = _LANE
    for cand in (1024, 512, 256):
        if n_pad % cand == 0:
            width = cand
            break
    rows = n_pad // width
    x2d = flat.reshape(rows, width)

    # Sub-32-bit dtypes pack along sublanes: keep the sublane tile a multiple
    # of the packing factor (f32 -> 8, bf16 -> 16, int8/fp8 -> 32).
    packing = max(1, 4 // itemsize)
    sublane = _SUBLANE * packing
    bytes_per_row = width * itemsize

    # Tile sizing: ~1 MiB cap (streaming roofline plateaus ~0.5-1 MiB; keeps
    # 4 resident buffers ~4 MiB, under every scoped-VMEM default), ~256 KiB
    # floor, and aim for >= 8 grid steps on larger inputs so both the software
    # pipeline and the v7x two-core split have work.
    rows_cap = max(sublane, ((1 << 20) // bytes_per_row) // sublane * sublane)
    rows_floor = max(sublane, ((256 << 10) // bytes_per_row) // sublane * sublane)
    step_rows = _round_up(pl.cdiv(rows, 8), sublane)
    tile_rows = int(min(rows_cap, max(rows_floor, step_rows)))

    if tile_rows >= rows:
        tile_rows = rows  # single full-extent block (always layout-legal)
    else:
        steps = pl.cdiv(rows, tile_rows)
        if steps > 1 and steps % 2 == 1:
            # Keep the step count even so v7x's two TensorCores get equal work.
            alt = _round_up(pl.cdiv(rows, steps + 1), sublane)
            if sublane <= alt < rows and pl.cdiv(rows, alt) % 2 == 0:
                tile_rows = alt

    grid = (pl.cdiv(rows, tile_rows),)

    out2d = pl.pallas_call(
        _swish_kernel,
        out_shape=jax.ShapeDtypeStruct((rows, width), orig_dtype),
        grid_spec=pltpu.PrefetchScalarGridSpec(
            num_scalar_prefetch=0,
            grid=grid,
            in_specs=[pl.BlockSpec((tile_rows, width), lambda i: (i, 0))],
            out_specs=pl.BlockSpec((tile_rows, width), lambda i: (i, 0)),
        ),
        compiler_params=pltpu.CompilerParams(
            dimension_semantics=("parallel",),
            # Tiles are small enough that the default scoped-VMEM limit is
            # ample on every generation; no explicit vmem_limit_bytes needed.
        ),
        # No input_output_aliases: aliasing a buffer the caller still owns
        # forces XLA to insert a full defensive copy (doubles HBM traffic).
    )(x2d)

    out = out2d
    if n_pad != n:
        out = out.reshape(-1)[:n]
    return out.reshape(orig_shape)


def swish(x, inplace: bool = False):
    """Swish - https://arxiv.org/abs/1710.05941 (inplace is a no-op in JAX)."""
    # TODO(synk): true in-place mutation has no JAX equivalent (arrays are
    # immutable); the functional result is returned either way.
    return swish_pallas(x)


class Swish:
    """Mirror of the PyTorch Swish module (inplace flag has no effect in JAX)."""

    def __init__(self, inplace: bool = False):
        self.inplace = inplace

    def __call__(self, x):
        return swish_pallas(x)


if __name__ == "__main__":
    key = jax.random.PRNGKey(0)
    mod = Swish(inplace=False)

    # 1) Module-spec NCHW shape (tiny): takes the fused-XLA small-input path.
    x_small = jax.random.normal(key, (2, 4, 16, 16), dtype=jnp.float32)
    y_small = jax.block_until_ready(mod(x_small))
    ref_small = x_small * jax.nn.sigmoid(x_small)
    assert y_small.shape == x_small.shape and y_small.dtype == x_small.dtype
    assert jnp.max(jnp.abs(y_small - ref_small)) < 1e-6

    # 2) Same tensor forced through the Pallas kernel (exact sigmoid -> tight tol).
    y_pk = jax.block_until_ready(swish_pallas(x_small, min_pallas_bytes=0))
    assert y_pk.shape == x_small.shape and y_pk.dtype == x_small.dtype
    assert jnp.allclose(y_pk, ref_small, atol=1e-6, rtol=1e-6)

    # 3) Ragged size: pad-to-128 + masked partial-block path.
    x_ragged = jax.random.normal(jax.random.PRNGKey(1), (3, 5, 7, 19), dtype=jnp.float32)
    y_r = jax.block_until_ready(swish_pallas(x_ragged, min_pallas_bytes=0))
    ref_r = x_ragged * jax.nn.sigmoid(x_ragged)
    assert y_r.shape == x_ragged.shape and y_r.dtype == x_ragged.dtype
    assert jnp.allclose(y_r, ref_r, atol=1e-6, rtol=1e-6)

    # 4) Medium tensor (2 MiB f32): exercises the multi-step pipelined grid.
    x_med = jax.random.normal(jax.random.PRNGKey(2), (2, 8, 32, 32, 32), dtype=jnp.float32)
    y_m = jax.block_until_ready(mod(x_med))
    ref_m = x_med * jax.nn.sigmoid(x_med)
    assert jnp.allclose(y_m, ref_m, atol=1e-6, rtol=1e-6)

    # 5) bf16 path (sublane packing factor 2).
    x_bf = jax.random.normal(jax.random.PRNGKey(3), (2, 64, 64, 64), dtype=jnp.bfloat16)
    y_bf = jax.block_until_ready(mod(x_bf))
    xf = x_bf.astype(jnp.float32)
    ref_bf = (xf * jax.nn.sigmoid(xf)).astype(jnp.bfloat16)
    assert y_bf.dtype == jnp.bfloat16 and y_bf.shape == x_bf.shape
    assert jnp.allclose(y_bf.astype(jnp.float32), ref_bf.astype(jnp.float32),
                        atol=2e-2, rtol=2e-2)

    print("KERNEL_OK")
</pallas_src>

<mosaic_0001>
module attributes {stable_mosaic.version = 11 : i64} {
  func.func @_swish_kernel(%arg0: i32, %arg1: memref<2x1024xf32, #tpu.memory_space<vmem>>, %arg2: memref<2x1024xf32, #tpu.memory_space<vmem>>) attributes {dimension_semantics = [#tpu.dimension_semantics<parallel>], iteration_bounds = array<i64: 1>, scalar_prefetch = 0 : i64, scratch_operands = 0 : i64, tpu.core_type = #tpu.core_type<tc>, window_params = [{transform_indices = @transform_0, window_bounds = array<i64: 2, 1024>}, {transform_indices = @transform_1, window_bounds = array<i64: 2, 1024>}]} {
    %c0 = arith.constant 0 : index
    %c0_0 = arith.constant 0 : index
    %0 = vector.load %arg1[%c0, %c0_0] : memref<2x1024xf32, #tpu.memory_space<vmem>>, vector<2x1024xf32>
    %1 = arith.negf %0 : vector<2x1024xf32>
    %2 = math.exp %1 : vector<2x1024xf32>
    %cst = arith.constant 1.000000e+00 : f32
    %3 = vector.broadcast %cst : f32 to vector<2x1024xf32>
    %4 = arith.addf %3, %2 : vector<2x1024xf32>
    %5 = arith.divf %3, %4 : vector<2x1024xf32>
    %6 = arith.mulf %0, %5 : vector<2x1024xf32>
    %c0_1 = arith.constant 0 : index
    %c0_2 = arith.constant 0 : index
    %7 = vector.load %arg2[%c0_1, %c0_2] : memref<2x1024xf32, #tpu.memory_space<vmem>>, vector<2x1024xf32>
    tpu.vector_store %arg2[%c0_1, %c0_2], %6 {strides = array<i32>} : memref<2x1024xf32, #tpu.memory_space<vmem>>, vector<2x1024xf32>,
    return
  }
  func.func @transform_0(%arg0: i32) -> (i32, i32) {
    %c0_i32 = arith.constant 0 : i32
    %c0_i32_0 = arith.constant 0 : i32
    return %arg0, %c0_i32 : i32, i32
  }
  func.func @transform_1(%arg0: i32) -> (i32, i32) {
    %c0_i32 = arith.constant 0 : i32
    %c0_i32_0 = arith.constant 0 : i32
    return %arg0, %c0_i32 : i32, i32
  }
}

</mosaic_0001>

<bundles_post_ra>
// kernel: tpu_custom_call.1
= control target key start
LH: loop header
LB: loop body
LE: loop exit
PB: predicated region body
PF: predicated region fallthrough
CT: control target
= control target key end

     0   :  { %6 = vsyncpa [#allocation3], 0  ;;  %s128_s0 = inlined_call_operand.hbm [shape: f32[2,1024], index: 0, kind: input, shape index: {}]   ;;  %s129_s1 = inlined_call_operand.hbm [shape: f32[2,1024], index: 1, kind: output, shape index: {}]  }
   0x1   :  { %7 = vsyncpa [#allocation4], 0  ;;  %s110_s6 = smov [#allocation2]  }
   0x2   :  { %s14_s7 = sshll.u32 %s110_s6, 4  ;;  %s15_s7 = int_to_ptr.vmem [resolvable:$true] %s14_s7 }
   0x3   :  { %s74_s8 = scalar_lea.vmem %s15_s7, 256  ;;  %p79_p1 = scmp.lt.s32.totalorder %s15_s7, %s15_s7 }
   0x4   :  { %p75_p0 = scmp.ne.s32.totalorder %s15_s7, %s74_s8  ;;  %p80_p2 = scmp.lt.s32.totalorder %s74_s8, %s74_s8 }
   0x6   :  { %p81_p3 = por %p80_p2, %p79_p1 }
   0x8   :  { %p82_p4 = pnand %p81_p3, %p75_p0 }
   0xa   :  { %85 = shalt.err (!%p82_p4)
}
   0xb   :  { %17 = dma.hbm_to_vmem [thread:$0]  %s128_s0, 256, %s15_s7, [#allocation3]  }
   0xc   :  { %106 = dma.done.wait [#allocation3], 256  }
   0xd   :  { %107 = vsyncadd [#allocation3], 4294967040  ;;  %v21_v0 = vld [vmem:[#allocation2] sm:$0xff]  ;;  %v22_v1 = vld [vmem:[#allocation2 + $0x8] sm:$0xff]  ;;  %s111_s11 = smov [#allocation5]  }
   0xe   :  { %v54_v2 = vmul.f32 -1.442695, %v21_v0  ;;  %v55_v3 = vmul.f32 -1.442695, %v22_v1  ;;  %s45_s12 = sshll.u32 %s111_s11, 4  ;;  %s46_s12 = int_to_ptr.vmem [resolvable:$true] %s45_s12 }
   0xf   :  { %s86_s0 = scalar_lea.vmem %s46_s12, 256  ;;  %p91_p6 = scmp.lt.s32.totalorder %s46_s12, %s46_s12 }
  0x10   :  { %58 = vpow2.f32 %v54_v2  ;;  %p87_p5 = scmp.ne.s32.totalorder %s46_s12, %s86_s0  ;;  %p92_p7 = scmp.lt.s32.totalorder %s86_s0, %s86_s0 }
  0x11   :  { %60 = vpow2.f32 %v55_v3 }
  0x12   :  { %p93_p8 = por %p92_p7, %p91_p6 }
  0x14   :  { %p94_p9 = pnand %p93_p8, %p87_p5 }
  0x1d   :  { %v59_v4 = vpop.eup %58 }
  0x1e   :  { %v61_v5 = vpop.eup %60  ;;  %v29_v6 = vadd.f32 1.0, %v59_v4 }
  0x1f   :  { %v30_v7 = vadd.f32 1.0, %v61_v5 }
  0x20   :  { %62 = vrcp.f32 %v29_v6 }
  0x21   :  { %64 = vrcp.f32 %v30_v7 }
  0x2d   :  { %v63_v8 = vpop.eup %62 }
  0x2e   :  { %v65_v9 = vpop.eup %64  ;;  %v35_v10 = vmul.f32 %v63_v8, %v21_v0 }
  0x2f   :  { %v36_v11 = vmul.f32 %v65_v9, %v22_v1 }
  0x30   :  { %37 = vst [vmem:[#allocation5] sm:$0xff] %v35_v10 }
  0x31   :  { %38 = vst [vmem:[#allocation5 + $0x8] sm:$0xff] %v36_v11 }
  0x32   :  { %97 = shalt.err (!%p94_p9)
}
  0x33   :  { %48 = dma.vmem_to_hbm [thread:$0]  %s46_s12, 256, %s129_s1, [#allocation4]  }
  0x34   :  { %108 = dma.done.wait [#allocation4], 256  }
  0x35   :  { %109 = vsyncadd [#allocation4], 4294967040 }
  0x36   :  { %52 = vsyncpa [#allocation3], 1 }
  0x37   :  { %53 = vsyncpa [#allocation4], 1 }

</bundles_post_ra>
